<compile_context>
chip_gen: v5e
topology: v5e:2x2
jax: 0.10.0
libtpu: 0.0.40
codegen_flags: <defaults>
</compile_context>

<pallas_src>
import functools

import jax
import jax.numpy as jnp
from jax.experimental import pallas as pl
from jax.experimental.pallas import tpu as pltpu

BN_EPS = 1e-5
HIDDEN = 128


def _decoder_kernel(theta1_ref, theta2_ref,
                    w1a_ref, b1a_ref, w2a_ref, b2a_ref,
                    w1b_ref, b1b_ref, w2b_ref, b2b_ref,
                    out1_ref, out2_ref, *, cross_prediction: bool):
    """Both modality branches unrolled as straight-line code (grid-free call).

    Each branch: Linear(d_in->128) -> ReLU -> [BN folded into W2/b2] ->
    Linear(128->mod_dim) -> log_softmax / softmax.
    """

    def branch(theta_ref, w1_ref, b1_ref, w2_ref, b2_ref, out_ref):
        # f*: (B, d_in) @ (d_in, 128) + (1, 128); bf16 inputs, f32 accumulation.
        h = jnp.dot(theta_ref[...].astype(jnp.bfloat16), w1_ref[...],
                    preferred_element_type=jnp.float32)
        h = h + b1_ref[...]
        # ReLU.  (BatchNorm folded into W2/b2; Dropout is identity in eval mode.)
        h = jnp.maximum(h, 0.0)
        # recon*: (B, 128) @ (128, mod_dim) + (1, mod_dim).
        logits = jnp.dot(h.astype(jnp.bfloat16), w2_ref[...],
                         preferred_element_type=jnp.float32)
        logits = logits + b2_ref[...]
        # (log_)softmax along the last (lane) axis.
        m = jnp.max(logits, axis=-1, keepdims=True)
        shifted = logits - m
        p = jnp.exp(shifted)
        denom = jnp.sum(p, axis=-1, keepdims=True)
        if cross_prediction:
            out_ref[...] = p * pl.reciprocal(denom, approx=True)
        else:
            out_ref[...] = shifted - jnp.log(denom)

    branch(theta1_ref, w1a_ref, b1a_ref, w2a_ref, b2a_ref, out1_ref)
    branch(theta2_ref, w1b_ref, b1b_ref, w2b_ref, b2b_ref, out2_ref)


def decoder_cobolt_forward(theta1, theta2, fused, batch_indices=None,
                           cross_prediction=False):
    """theta1/theta2: (B, z_dim + dim) float32. Returns (log_)softmax per branch."""
    del batch_indices  # unused, as in the PyTorch module's forward
    B = theta1.shape[0]
    d_in1 = theta1.shape[1]
    d_in2 = theta2.shape[1]
    H = fused["w1a"].shape[-1]
    mod1_dim = fused["w2a"].shape[-1]
    mod2_dim = fused["w2b"].shape[-1]

    args = (theta1, theta2,
            fused["w1a"], fused["b1a"], fused["w2a"], fused["b2a"],
            fused["w1b"], fused["b1b"], fused["w2b"], fused["b2b"])

    flops = 2 * B * (d_in1 * H + H * mod1_dim) + 2 * B * (d_in2 * H + H * mod2_dim)
    transcendentals = B * (mod1_dim + mod2_dim)
    bytes_accessed = (sum(a.size * a.dtype.itemsize for a in args)
                      + 4 * B * (mod1_dim + mod2_dim))

    vmem = pl.BlockSpec(memory_space=pltpu.MemorySpace.VMEM)
    kernel = functools.partial(_decoder_kernel, cross_prediction=cross_prediction)

    out1, out2 = pl.pallas_call(
        kernel,
        out_shape=(jax.ShapeDtypeStruct((B, mod1_dim), jnp.float32),
                   jax.ShapeDtypeStruct((B, mod2_dim), jnp.float32)),
        in_specs=[vmem] * len(args),
        out_specs=(vmem, vmem),
        cost_estimate=pl.CostEstimate(
            flops=flops,
            transcendentals=transcendentals,
            bytes_accessed=bytes_accessed,
        ),
    )(*args)
    return out1, out2


def prepare_fused_params(p, weight_dtype=jnp.bfloat16):
    """Fold eval-mode BatchNorm into the recon linears; cast weights to bf16."""

    def fold(w1, b1, gamma, beta, mean, var, w2, b2):
        s = gamma * jax.lax.rsqrt(var + BN_EPS)          # (1, H)
        c = beta - mean * s                              # (1, H)
        w2f = s.reshape(-1, 1) * w2                      # (H, mod_dim)
        b2f = c @ w2 + b2                                # (1, mod_dim)
        return (w1.astype(weight_dtype), b1.astype(jnp.float32),
                w2f.astype(weight_dtype), b2f.astype(jnp.float32))

    w1a, b1a, w2a, b2a = fold(p["f1_w"], p["f1_b"], p["bn1_g"], p["bn1_b"],
                              p["bn1_m"], p["bn1_v"], p["recon1_w"], p["recon1_b"])
    w1b, b1b, w2b, b2b = fold(p["f2_w"], p["f2_b"], p["bn2_g"], p["bn2_b"],
                              p["bn2_m"], p["bn2_v"], p["recon2_w"], p["recon2_b"])
    return dict(w1a=w1a, b1a=b1a, w2a=w2a, b2a=b2a,
                w1b=w1b, b1b=b1b, w2b=w2b, b2b=b2b)


# ---------------------------------------------------------------------------
# Pure-JAX reference (un-folded BN, f32, matches the PyTorch eval-mode forward).
# ---------------------------------------------------------------------------
def _reference_branch(theta, w1, b1, gamma, beta, mean, var, w2, b2):
    h = theta @ w1 + b1
    h = jnp.maximum(h, 0.0)
    h = (h - mean) / jnp.sqrt(var + BN_EPS) * gamma + beta
    logits = h @ w2 + b2
    return jax.nn.log_softmax(logits, axis=-1)


def init_params(key, z_dim, dim, mod1_dim, mod2_dim, hidden=HIDDEN):
    d_in = z_dim + dim
    ks = jax.random.split(key, 8)

    def lin(k, din, dout):
        kw, kb = jax.random.split(k)
        scale = 1.0 / jnp.sqrt(din)
        w = jax.random.uniform(kw, (din, dout), jnp.float32, -scale, scale)
        b = jax.random.uniform(kb, (1, dout), jnp.float32, -scale, scale)
        return w, b

    f1_w, f1_b = lin(ks[0], d_in, hidden)
    recon1_w, recon1_b = lin(ks[1], hidden, mod1_dim)
    f2_w, f2_b = lin(ks[2], d_in, hidden)
    recon2_w, recon2_b = lin(ks[3], hidden, mod2_dim)
    bn1_g = jnp.ones((1, hidden), jnp.float32)
    bn1_b = jnp.zeros((1, hidden), jnp.float32)
    bn1_m = 0.05 * jax.random.normal(ks[4], (1, hidden), jnp.float32)
    bn1_v = 1.0 + 0.1 * jax.random.uniform(ks[5], (1, hidden), jnp.float32)
    bn2_g = jnp.ones((1, hidden), jnp.float32)
    bn2_b = jnp.zeros((1, hidden), jnp.float32)
    bn2_m = 0.05 * jax.random.normal(ks[6], (1, hidden), jnp.float32)
    bn2_v = 1.0 + 0.1 * jax.random.uniform(ks[7], (1, hidden), jnp.float32)
    return dict(f1_w=f1_w, f1_b=f1_b, bn1_g=bn1_g, bn1_b=bn1_b, bn1_m=bn1_m, bn1_v=bn1_v,
                recon1_w=recon1_w, recon1_b=recon1_b,
                f2_w=f2_w, f2_b=f2_b, bn2_g=bn2_g, bn2_b=bn2_b, bn2_m=bn2_m, bn2_v=bn2_v,
                recon2_w=recon2_w, recon2_b=recon2_b)


if __name__ == "__main__":
    # Small, shape-consistent problem: z_dim=16, dim=16 -> input 32 features.
    B, z_dim, dim = 8, 16, 16
    mod1_dim, mod2_dim = 256, 384

    key = jax.random.PRNGKey(0)
    k_in1, k_in2, k_par = jax.random.split(key, 3)
    theta1 = jax.random.normal(k_in1, (B, z_dim + dim), jnp.float32)
    theta2 = jax.random.normal(k_in2, (B, z_dim + dim), jnp.float32)
    params = init_params(k_par, z_dim, dim, mod1_dim, mod2_dim)
    fused = prepare_fused_params(params)

    # cross_prediction=False path (log_softmax).
    out1, out2 = decoder_cobolt_forward(theta1, theta2, fused,
                                        batch_indices=None, cross_prediction=False)
    out1 = jax.block_until_ready(out1)
    out2 = jax.block_until_ready(out2)

    ref1 = _reference_branch(theta1, params["f1_w"], params["f1_b"], params["bn1_g"],
                             params["bn1_b"], params["bn1_m"], params["bn1_v"],
                             params["recon1_w"], params["recon1_b"])
    ref2 = _reference_branch(theta2, params["f2_w"], params["f2_b"], params["bn2_g"],
                             params["bn2_b"], params["bn2_m"], params["bn2_v"],
                             params["recon2_w"], params["recon2_b"])
    assert out1.shape == (B, mod1_dim) and out2.shape == (B, mod2_dim)
    # bf16 weight storage -> slightly looser tolerance vs. the f32 reference.
    assert jnp.allclose(out1, ref1, atol=2e-2), "mod1 log_softmax mismatch"
    assert jnp.allclose(out2, ref2, atol=2e-2), "mod2 log_softmax mismatch"

    # cross_prediction=True path (softmax).
    s1, s2 = decoder_cobolt_forward(theta1, theta2, fused,
                                    batch_indices=None, cross_prediction=True)
    s1 = jax.block_until_ready(s1)
    s2 = jax.block_until_ready(s2)
    assert jnp.allclose(s1, jnp.exp(ref1), atol=1e-3), "mod1 softmax mismatch"
    assert jnp.allclose(s2, jnp.exp(ref2), atol=1e-3), "mod2 softmax mismatch"

    print("KERNEL_OK")
</pallas_src>

<mosaic_0001>
module attributes {stable_mosaic.version = 11 : i64} {
  func.func @_decoder_kernel(%arg0: memref<8x32xf32, #tpu.memory_space<vmem>>, %arg1: memref<8x32xf32, #tpu.memory_space<vmem>>, %arg2: memref<32x128xbf16, #tpu.memory_space<vmem>>, %arg3: memref<1x128xf32, #tpu.memory_space<vmem>>, %arg4: memref<128x256xbf16, #tpu.memory_space<vmem>>, %arg5: memref<1x256xf32, #tpu.memory_space<vmem>>, %arg6: memref<32x128xbf16, #tpu.memory_space<vmem>>, %arg7: memref<1x128xf32, #tpu.memory_space<vmem>>, %arg8: memref<128x384xbf16, #tpu.memory_space<vmem>>, %arg9: memref<1x384xf32, #tpu.memory_space<vmem>>, %arg10: memref<8x256xf32, #tpu.memory_space<vmem>>, %arg11: memref<8x384xf32, #tpu.memory_space<vmem>>) attributes {dimension_semantics = [], scalar_prefetch = 0 : i64, scratch_operands = 0 : i64, tpu.core_type = #tpu.core_type<tc>} {
    %c0 = arith.constant 0 : index
    %c0_0 = arith.constant 0 : index
    %0 = vector.load %arg0[%c0, %c0_0] : memref<8x32xf32, #tpu.memory_space<vmem>>, vector<8x32xf32>
    %1 = arith.truncf %0 : vector<8x32xf32> to vector<8x32xbf16>
    %c0_1 = arith.constant 0 : index
    %c0_2 = arith.constant 0 : index
    %2 = vector.load %arg2[%c0_1, %c0_2] : memref<32x128xbf16, #tpu.memory_space<vmem>>, vector<32x128xbf16>
    %cst = arith.constant dense<0.000000e+00> : vector<8x128xf32>
    %3 = tpu.matmul %1, %2, %cst {dimension_numbers = #tpu.dot_dimension_numbers<[1], [0], [0], [1], [0, 0, 1, 1], [], []>} : vector<8x32xbf16>, vector<32x128xbf16>, vector<8x128xf32> -> vector<8x128xf32>
    %c0_3 = arith.constant 0 : index
    %c0_4 = arith.constant 0 : index
    %4 = vector.load %arg3[%c0_3, %c0_4] : memref<1x128xf32, #tpu.memory_space<vmem>>, vector<1x128xf32>
    %5 = vector.broadcast %4 : vector<1x128xf32> to vector<8x128xf32>
    %6 = arith.addf %3, %5 : vector<8x128xf32>
    %cst_5 = arith.constant 0.000000e+00 : f32
    %7 = vector.broadcast %cst_5 : f32 to vector<8x128xf32>
    %8 = arith.maximumf %6, %7 : vector<8x128xf32>
    %9 = arith.truncf %8 : vector<8x128xf32> to vector<8x128xbf16>
    %c0_6 = arith.constant 0 : index
    %c0_7 = arith.constant 0 : index
    %10 = vector.load %arg4[%c0_6, %c0_7] : memref<128x256xbf16, #tpu.memory_space<vmem>>, vector<128x256xbf16>
    %cst_8 = arith.constant dense<0.000000e+00> : vector<8x256xf32>
    %11 = tpu.matmul %9, %10, %cst_8 {dimension_numbers = #tpu.dot_dimension_numbers<[1], [0], [0], [1], [0, 0, 1, 1], [], []>} : vector<8x128xbf16>, vector<128x256xbf16>, vector<8x256xf32> -> vector<8x256xf32>
    %c0_9 = arith.constant 0 : index
    %c0_10 = arith.constant 0 : index
    %12 = vector.load %arg5[%c0_9, %c0_10] : memref<1x256xf32, #tpu.memory_space<vmem>>, vector<1x256xf32>
    %13 = vector.broadcast %12 : vector<1x256xf32> to vector<8x256xf32>
    %14 = arith.addf %11, %13 : vector<8x256xf32>
    %cst_11 = arith.constant dense<0xFF800000> : vector<8xf32>
    %15 = vector.multi_reduction <maximumf>, %14, %cst_11 [1] : vector<8x256xf32> to vector<8xf32>
    %16 = vector.shape_cast %15 : vector<8xf32> to vector<8x1xf32>
    %17 = vector.broadcast %16 : vector<8x1xf32> to vector<8x256xf32>
    %18 = arith.subf %14, %17 : vector<8x256xf32>
    %19 = math.exp %18 : vector<8x256xf32>
    %cst_12 = arith.constant dense<0.000000e+00> : vector<8xf32>
    %20 = vector.multi_reduction <add>, %19, %cst_12 [1] : vector<8x256xf32> to vector<8xf32>
    %21 = vector.shape_cast %20 : vector<8xf32> to vector<8x1xf32>
    %22 = math.log %21 : vector<8x1xf32>
    %23 = vector.broadcast %22 : vector<8x1xf32> to vector<8x256xf32>
    %24 = arith.subf %18, %23 : vector<8x256xf32>
    %c0_13 = arith.constant 0 : index
    %c0_14 = arith.constant 0 : index
    %25 = vector.load %arg10[%c0_13, %c0_14] : memref<8x256xf32, #tpu.memory_space<vmem>>, vector<8x256xf32>
    tpu.vector_store %arg10[%c0_13, %c0_14], %24 {strides = array<i32>} : memref<8x256xf32, #tpu.memory_space<vmem>>, vector<8x256xf32>,
    %c0_15 = arith.constant 0 : index
    %c0_16 = arith.constant 0 : index
    %26 = vector.load %arg1[%c0_15, %c0_16] : memref<8x32xf32, #tpu.memory_space<vmem>>, vector<8x32xf32>
    %27 = arith.truncf %26 : vector<8x32xf32> to vector<8x32xbf16>
    %c0_17 = arith.constant 0 : index
    %c0_18 = arith.constant 0 : index
    %28 = vector.load %arg6[%c0_17, %c0_18] : memref<32x128xbf16, #tpu.memory_space<vmem>>, vector<32x128xbf16>
    %cst_19 = arith.constant dense<0.000000e+00> : vector<8x128xf32>
    %29 = tpu.matmul %27, %28, %cst_19 {dimension_numbers = #tpu.dot_dimension_numbers<[1], [0], [0], [1], [0, 0, 1, 1], [], []>} : vector<8x32xbf16>, vector<32x128xbf16>, vector<8x128xf32> -> vector<8x128xf32>
    %c0_20 = arith.constant 0 : index
    %c0_21 = arith.constant 0 : index
    %30 = vector.load %arg7[%c0_20, %c0_21] : memref<1x128xf32, #tpu.memory_space<vmem>>, vector<1x128xf32>
    %31 = vector.broadcast %30 : vector<1x128xf32> to vector<8x128xf32>
    %32 = arith.addf %29, %31 : vector<8x128xf32>
    %cst_22 = arith.constant 0.000000e+00 : f32
    %33 = vector.broadcast %cst_22 : f32 to vector<8x128xf32>
    %34 = arith.maximumf %32, %33 : vector<8x128xf32>
    %35 = arith.truncf %34 : vector<8x128xf32> to vector<8x128xbf16>
    %c0_23 = arith.constant 0 : index
    %c0_24 = arith.constant 0 : index
    %36 = vector.load %arg8[%c0_23, %c0_24] : memref<128x384xbf16, #tpu.memory_space<vmem>>, vector<128x384xbf16>
    %cst_25 = arith.constant dense<0.000000e+00> : vector<8x384xf32>
    %37 = tpu.matmul %35, %36, %cst_25 {dimension_numbers = #tpu.dot_dimension_numbers<[1], [0], [0], [1], [0, 0, 1, 1], [], []>} : vector<8x128xbf16>, vector<128x384xbf16>, vector<8x384xf32> -> vector<8x384xf32>
    %c0_26 = arith.constant 0 : index
    %c0_27 = arith.constant 0 : index
    %38 = vector.load %arg9[%c0_26, %c0_27] : memref<1x384xf32, #tpu.memory_space<vmem>>, vector<1x384xf32>
    %39 = vector.broadcast %38 : vector<1x384xf32> to vector<8x384xf32>
    %40 = arith.addf %37, %39 : vector<8x384xf32>
    %cst_28 = arith.constant dense<0xFF800000> : vector<8xf32>
    %41 = vector.multi_reduction <maximumf>, %40, %cst_28 [1] : vector<8x384xf32> to vector<8xf32>
    %42 = vector.shape_cast %41 : vector<8xf32> to vector<8x1xf32>
    %43 = vector.broadcast %42 : vector<8x1xf32> to vector<8x384xf32>
    %44 = arith.subf %40, %43 : vector<8x384xf32>
    %45 = math.exp %44 : vector<8x384xf32>
    %cst_29 = arith.constant dense<0.000000e+00> : vector<8xf32>
    %46 = vector.multi_reduction <add>, %45, %cst_29 [1] : vector<8x384xf32> to vector<8xf32>
    %47 = vector.shape_cast %46 : vector<8xf32> to vector<8x1xf32>
    %48 = math.log %47 : vector<8x1xf32>
    %49 = vector.broadcast %48 : vector<8x1xf32> to vector<8x384xf32>
    %50 = arith.subf %44, %49 : vector<8x384xf32>
    %c0_30 = arith.constant 0 : index
    %c0_31 = arith.constant 0 : index
    %51 = vector.load %arg11[%c0_30, %c0_31] : memref<8x384xf32, #tpu.memory_space<vmem>>, vector<8x384xf32>
    tpu.vector_store %arg11[%c0_30, %c0_31], %50 {strides = array<i32>} : memref<8x384xf32, #tpu.memory_space<vmem>>, vector<8x384xf32>,
    return
  }
}

</mosaic_0001>

<bundles_post_ra>
// kernel: tpu_custom_call.1
= control target key start
LH: loop header
LB: loop body
LE: loop exit
PB: predicated region body
PF: predicated region fallthrough
CT: control target
= control target key end

     0   :  { %17 = vsyncpa [#allocation3], 0  ;;  %s1232_s0 = inlined_call_operand.hbm [shape: f32[8,32], index: 0, kind: input, shape index: {}]   ;;  %s1233_s1 = inlined_call_operand.hbm [shape: f32[8,32], index: 1, kind: input, shape index: {}]   ;;  %s1234_s2 = inlined_call_operand.hbm [shape: bf16[32,128], index: 2, kind: input, shape index: {}]   ;;  %s1235_s3 = inlined_call_operand.hbm [shape: f32[1,128], index: 3, kind: input, shape index: {}]   ;;  %s1236_s4 = inlined_call_operand.hbm [shape: bf16[128,256], index: 4, kind: input, shape index: {}]   ;;  %s1237_s5 = inlined_call_operand.vmem [shape: f32[1,256], index: 5, kind: input, shape index: {}]   ;;  %s1238_s6 = inlined_call_operand.hbm [shape: bf16[32,128], index: 6, kind: input, shape index: {}]   ;;  %s1239_s7 = inlined_call_operand.vmem [shape: f32[1,128], index: 7, kind: input, shape index: {}]   ;;  %s1240_s8 = inlined_call_operand.hbm [shape: bf16[128,384], index: 8, kind: input, shape index: {}]   ;;  %s1241_s9 = inlined_call_operand.vmem [shape: f32[1,384], index: 9, kind: input, shape index: {}]   ;;  %s1242_s10 = inlined_call_operand.hbm [shape: f32[8,256], index: 10, kind: output, shape index: {0}]   ;;  %s1243_s11 = inlined_call_operand.hbm [shape: f32[8,384], index: 11, kind: output, shape index: {1}]  }
   0x1   :  { %18 = vsyncpa [#allocation6], 0 }
   0x2   :  { %19 = vsyncpa [#allocation9], 0 }
   0x3   :  { %20 = vsyncpa [#allocation12], 0 }
   0x4   :  { %21 = vsyncpa [#allocation4], 0  ;;  %s39_s19 = sshll.u32 %s1233_s1, 4  ;;  %s40_s19 = int_to_ptr.hbm [resolvable:$true] %s39_s19 }
   0x5   :  { %22 = vsyncpa [#allocation16], 0  ;;  %s1119_s20 = smov [#allocation5]   ;;  %s63_s24 = sshll.u32 %s1235_s3, 4  ;;  %s64_s24 = int_to_ptr.hbm [resolvable:$true] %s63_s24 }
   0x6   :  { %s41_s21 = sshll.u32 %s1119_s20, 4  ;;  %s1120_s25 = smov [#allocation8]   ;;  %s42_s21 = int_to_ptr.vmem [resolvable:$true] %s41_s21 }
   0x7   :  { %44 = dma.hbm_to_vmem [thread:$0]  %s40_s19, 128, %s42_s21, [#allocation6]  }
   0x8   :  { %s65_s26 = sshll.u32 %s1120_s25, 4  ;;  %s88_s29 = sshll.u32 %s1238_s6, 4  ;;  %s66_s26 = int_to_ptr.vmem [resolvable:$true] %s65_s26  ;;  %s89_s29 = int_to_ptr.hbm [resolvable:$true] %s88_s29 }
   0x9   :  { %68 = dma.hbm_to_vmem [thread:$0]  %s64_s24, 16, %s66_s26, [#allocation9]  }
   0xa   :  { %s1121_s1 = smov [#allocation11]   ;;  %s28_s14 = sshll.u32 %s1232_s0, 4  ;;  %s29_s14 = int_to_ptr.hbm [resolvable:$true] %s28_s14 }
   0xb   :  { %s90_s30 = sshll.u32 %s1121_s1, 4  ;;  %s1122_s15 = smov 64   ;;  %s91_s30 = int_to_ptr.vmem [resolvable:$true] %s90_s30 }
   0xc   :  { %s1123_s3 = smov 4   ;;  %s1124_s16 = smov [#allocation2]  }
   0xd   :  { %96 = dma.hbm_to_vmem [thread:$0]  %s89_s29, 256, %s91_s30, [#allocation12], %s1122_s15, %s1122_s15, %s1123_s3  }
   0xe   :  { %s30_s17 = sshll.u32 %s1124_s16, 4  ;;  %s49_s20 = sshll.u32 %s1234_s2, 4  ;;  %s31_s17 = int_to_ptr.vmem [resolvable:$true] %s30_s17  ;;  %s50_s20 = int_to_ptr.hbm [resolvable:$true] %s49_s20 }
   0xf   :  { %33 = dma.hbm_to_vmem [thread:$0]  %s29_s14, 128, %s31_s17, [#allocation3]  }
  0x10   :  { %s73_s22 = sshll.u32 %s1236_s4, 4  ;;  %s1125_s23 = smov [#allocation7]   ;;  %s74_s22 = int_to_ptr.hbm [resolvable:$true] %s73_s22 }
  0x11   :  { %s51_s24 = sshll.u32 %s1125_s23, 4  ;;  %s1126_s0 = smov [#allocation10]   ;;  %s52_s24 = int_to_ptr.vmem [resolvable:$true] %s51_s24 }
  0x12   :  { %57 = dma.hbm_to_vmem [thread:$0]  %s50_s20, 256, %s52_s24, [#allocation6], %s1122_s15, %s1122_s15, %s1123_s3  }
  0x13   :  { %s75_s25 = sshll.u32 %s1126_s0, 4  ;;  %s1127_s26 = smov 128   ;;  %s76_s25 = int_to_ptr.vmem [resolvable:$true] %s75_s25 }
  0x14   :  { %s1128_s27 = smov 8   ;;  %s103_s29 = sshll.u32 %s1240_s8, 4  ;;  %s104_s29 = int_to_ptr.hbm [resolvable:$true] %s103_s29 }
  0x15   :  { %81 = dma.hbm_to_vmem [thread:$0]  %s74_s22, 2048, %s76_s25, [#allocation9], %s1127_s26, %s1127_s26, %s1128_s27  }
  0x16   :  { %s1129_s1 = smov [#allocation13]   ;;  %s1130_s4 = smov 192  }
  0x17   :  { %s105_s30 = sshll.u32 %s1129_s1, 4  ;;  %s1131_s12 = smov 12   ;;  %s106_s30 = int_to_ptr.vmem [resolvable:$true] %s105_s30 }
  0x18   :  { %111 = dma.hbm_to_vmem [thread:$0]  %s104_s29, 3072, %s106_s30, [#allocation12], %s1130_s4, %s1130_s4, %s1131_s12  }
  0x19   :  { %1107 = dma.done.wait [#allocation3], 128  }
  0x1a   :  { %1108 = vsyncadd [#allocation3], 4294967168 }
  0x1b   :  { %1109 = dma.done.wait [#allocation6], 384  }
  0x1c   :  { %1110 = vsyncadd [#allocation6], 4294966912 }
  0x1d   :  { %1111 = dma.done.wait [#allocation9], 2064  }
  0x1e   :  { %1112 = vsyncadd [#allocation9], 4294965232 }
  0x1f   :  { %1113 = dma.done.wait [#allocation12], 3328  }
  0x20   :  { %1114 = vsyncadd [#allocation12], 4294963968  ;;  %v817_v0 = vld [vmem:[#allocation7 + $0x8] sm:$0xff]  ;;  %v835_v1 = vld [vmem:[#allocation11 + $0x8] sm:$0xff]  ;;  %vm165_vm0 = vcmask 261120   ;;  %s609_s18 = sshll.u32 %s1242_s10, 4  ;;  %s610_s18 = int_to_ptr.hbm [resolvable:$true] %s609_s18 }
  0x21   :  { %v816_v2 = vld [vmem:[#allocation7] sm:$0xff]  ;;  %v834_v3 = vld [vmem:[#allocation11] sm:$0xff]  ;;  %175 = vmatpush.bf16.msra.mxu0 %v817_v0  ;;  %361 = vmatpush.bf16.msra.mxu3 %v835_v1  ;;  %v833_v7 = vld [vmem:[#allocation10 + $0x74] sm:$0xf0]  ;;  %s1133_s19 = smov [#allocation15]   ;;  %s620_s22 = sshll.u32 %s1243_s11, 4  ;;  %s621_s22 = int_to_ptr.hbm [resolvable:$true] %s620_s22 }
  0x22   :  { %v143_v4 = vld [vmem:[#allocation2] sm:$0xff]  ;;  %v330_v5 = vld [vmem:[#allocation5] sm:$0xff]  ;;  %v705_v6 = vld [vmem:[#allocation10 + $0x70] sm:$0xf]  ;;  %s618_s20 = sshll.u32 %s1133_s19, 4  ;;  %s619_s20 = int_to_ptr.vmem [resolvable:$true] %s618_s20 }
  0x23   :  { %v706_v8 = vor.u32 %v833_v7, %v705_v6  ;;  %v697_v9 = vld [vmem:[#allocation10 + $0x60] sm:$0xf]  ;;  %v831_v10 = vld [vmem:[#allocation10 + $0x64] sm:$0xf0]  ;;  %v832_v11 = vld [vmem:[#allocation10 + $0x74] sm:$0xf]  ;;  %v144_v12 = vpack.c.bf16 %v143_v4, %v143_v4  ;;  %v331_v13 = vpack.c.bf16 %v330_v5, %v330_v5 }
  0x24   :  { %v689_v14 = vld [vmem:[#allocation10 + $0x50] sm:$0xf]  ;;  %v829_v15 = vld [vmem:[#allocation10 + $0x54] sm:$0xf0]  ;;  %v707_v16 = vld [vmem:[#allocation10 + $0x78] sm:$0xf0]  ;;  %v698_v17 = vor.u32 %v831_v10, %v697_v9 }
  0x25   :  { %286 = vmatpush.bf16.msra.mxu1 %v706_v8  ;;  %176 = vmatpush.bf16.msra.mxu0 %v816_v2  ;;  %v710_v18 = vor.u32 %v832_v11, %v707_v16  ;;  %v830_v19 = vld [vmem:[#allocation10 + $0x64] sm:$0xf]  ;;  %v699_v20 = vld [vmem:[#allocation10 + $0x68] sm:$0xf0]  ;;  %v806_v21 = vld [vmem:[#allocation13 + $0xa8] sm:$0xf]  ;;  %v690_v32 = vor.u32 %v829_v15, %v689_v14 }
  0x26   :  { %362 = vmatpush.bf16.msra.mxu3 %v834_v3  ;;  %v858_v22 = vld [vmem:[#allocation13 + $0xb0] sm:$0xf0]  ;;  %v857_v23 = vld [vmem:[#allocation13 + $0xac] sm:$0xf]  ;;  %v808_v24 = vld [vmem:[#allocation13 + $0xb4] sm:$0xf0]  ;;  %v702_v25 = vor.u32 %v830_v19, %v699_v20 }
  0x27   :  { %299 = vmatpush.bf16.msra.mxu2 %v710_v18  ;;  %v807_v26 = vor.u32 %v858_v22, %v806_v21  ;;  %v811_v27 = vor.u32 %v857_v23, %v808_v24  ;;  %v828_v28 = vld [vmem:[#allocation10 + $0x54] sm:$0xf]  ;;  %v691_v29 = vld [vmem:[#allocation10 + $0x58] sm:$0xf0]  ;;  %v794_v30 = vld [vmem:[#allocation13 + $0x90] sm:$0xf] }
  0x28   :  { %646 = vmatmul.msk.bf16.vlgmr.msra.gmra.mxu0 %vm165_vm0, %v144_v12  ;;  %v855_v31 = vld [vmem:[#allocation13 + $0x98] sm:$0xf0]  ;;  %v854_v34 = vld [vmem:[#allocation13 + $0x94] sm:$0xf]  ;;  %v796_v35 = vld [vmem:[#allocation13 + $0x9c] sm:$0xf0]  ;;  %v694_v39 = vor.u32 %v828_v28, %v691_v29 }
  0x29   :  { %719 = vmatmul.msk.bf16.vlgmr.msra.gmra.mxu3 %vm165_vm0, %v331_v13  ;;  %287 = vmatpush.bf16.msra.mxu1 %v698_v17  ;;  %v795_v33 = vor.u32 %v855_v31, %v794_v30  ;;  %v681_v36 = vld [vmem:[#allocation10 + $0x40] sm:$0xf]  ;;  %v827_v37 = vld [vmem:[#allocation10 + $0x44] sm:$0xf0]  ;;  %v799_v38 = vor.u32 %v854_v34, %v796_v35  ;;  %v852_v41 = vld [vmem:[#allocation13 + $0x80] sm:$0xf0] }
  0x2a   :  { %538 = vmatpush.bf16.msrb.mxu0 %v807_v26  ;;  %551 = vmatpush.bf16.msrb.mxu3 %v811_v27  ;;  %v782_v40 = vld [vmem:[#allocation13 + $0x78] sm:$0xf]  ;;  %v851_v42 = vld [vmem:[#allocation13 + $0x7c] sm:$0xf]  ;;  %v826_v43 = vld [vmem:[#allocation10 + $0x44] sm:$0xf]  ;;  %v682_v46 = vor.u32 %v827_v37, %v681_v36 }
  0x2b   :  { %300 = vmatpush.bf16.msra.mxu2 %v702_v25  ;;  %v683_v44 = vld [vmem:[#allocation10 + $0x48] sm:$0xf0]  ;;  %v784_v45 = vld [vmem:[#allocation13 + $0x84] sm:$0xf0]  ;;  %v673_v47 = vld [vmem:[#allocation10 + $0x30] sm:$0xf]  ;;  %v783_v48 = vor.u32 %v852_v41, %v782_v40 }
  0x2c   :  { %v825_v49 = vld [vmem:[#allocation10 + $0x34] sm:$0xf0]  ;;  %v787_v50 = vor.u32 %v851_v42, %v784_v45  ;;  %v770_v51 = vld [vmem:[#allocation13 + $0x60] sm:$0xf]  ;;  %v849_v52 = vld [vmem:[#allocation13 + $0x68] sm:$0xf0]  ;;  %v686_v53 = vor.u32 %v826_v43, %v683_v44 }
  0x2d   :  { %288 = vmatpush.bf16.msra.mxu1 %v690_v32  ;;  %v848_v54 = vld [vmem:[#allocation13 + $0x64] sm:$0xf]  ;;  %v772_v55 = vld [vmem:[#allocation13 + $0x6c] sm:$0xf0]  ;;  %v675_v57 = vld [vmem:[#allocation10 + $0x38] sm:$0xf0]  ;;  %v674_v58 = vor.u32 %v825_v49, %v673_v47  ;;  %v771_v61 = vor.u32 %v849_v52, %v770_v51 }
  0x2e   :  { %539 = vmatpush.bf16.msrb.mxu0 %v795_v33  ;;  %552 = vmatpush.bf16.msrb.mxu3 %v799_v38  ;;  %v824_v56 = vld [vmem:[#allocation10 + $0x34] sm:$0xf]  ;;  %v665_v59 = vld [vmem:[#allocation10 + $0x20] sm:$0xf]  ;;  %v823_v60 = vld [vmem:[#allocation10 + $0x24] sm:$0xf0]  ;;  %v775_v62 = vor.u32 %v848_v54, %v772_v55 }
  0x2f   :  { %301 = vmatpush.bf16.msra.mxu2 %v694_v39  ;;  %v758_v63 = vld [vmem:[#allocation13 + $0x48] sm:$0xf]  ;;  %v846_v0 = vld [vmem:[#allocation13 + $0x50] sm:$0xf0]  ;;  %v678_v1 = vor.u32 %v824_v56, %v675_v57  ;;  %v845_v2 = vld [vmem:[#allocation13 + $0x4c] sm:$0xf]  ;;  %v666_v6 = vor.u32 %v823_v60, %v665_v59 }
  0x30   :  { %v760_v3 = vld [vmem:[#allocation13 + $0x54] sm:$0xf0]  ;;  %v822_v4 = vld [vmem:[#allocation10 + $0x24] sm:$0xf]  ;;  %v667_v5 = vld [vmem:[#allocation10 + $0x28] sm:$0xf0]  ;;  %v759_v7 = vor.u32 %v846_v0, %v758_v63 }
  0x31   :  { %289 = vmatpush.bf16.msra.mxu1 %v682_v46  ;;  %v657_v8 = vld [vmem:[#allocation10 + $0x10] sm:$0xf]  ;;  %v821_v9 = vld [vmem:[#allocation10 + $0x14] sm:$0xf0]  ;;  %v763_v10 = vor.u32 %v845_v2, %v760_v3  ;;  %v670_v11 = vor.u32 %v822_v4, %v667_v5  ;;  %v649_v13 = vld [vmem:[#allocation10] sm:$0xf] }
  0x32   :  { %540 = vmatpush.bf16.msrb.mxu0 %v783_v48  ;;  %553 = vmatpush.bf16.msrb.mxu3 %v787_v50  ;;  %v658_v12 = vor.u32 %v821_v9, %v657_v8  ;;  %v819_v14 = vld [vmem:[#allocation10 + $0x4] sm:$0xf0]  ;;  %v814_v15 = vld [vmem:[#allocation13 + $0xb0] sm:$0xf]  ;;  %v859_v16 = vld [vmem:[#allocation13 + $0xb8] sm:$0xf0] }
  0x33   :  { %302 = vmatpush.bf16.msra.mxu2 %v686_v53  ;;  %v650_v17 = vor.u32 %v819_v14, %v649_v13  ;;  %v815_v18 = vor.u32 %v859_v16, %v814_v15  ;;  %v802_v19 = vld [vmem:[#allocation13 + $0x98] sm:$0xf]  ;;  %v856_v20 = vld [vmem:[#allocation13 + $0xa0] sm:$0xf0]  ;;  %v659_v23 = vld [vmem:[#allocation10 + $0x18] sm:$0xf0] }
  0x34   :  { %v803_v21 = vor.u32 %v856_v20, %v802_v19  ;;  %v820_v22 = vld [vmem:[#allocation10 + $0x14] sm:$0xf]  ;;  %v790_v24 = vld [vmem:[#allocation13 + $0x80] sm:$0xf]  ;;  %v853_v26 = vld [vmem:[#allocation13 + $0x88] sm:$0xf0] }
  0x35   :  { %290 = vmatpush.bf16.msra.mxu1 %v674_v58  ;;  %v662_v25 = vor.u32 %v820_v22, %v659_v23  ;;  %v791_v27 = vor.u32 %v853_v26, %v790_v24  ;;  %v746_v28 = vld [vmem:[#allocation13 + $0x30] sm:$0xf]  ;;  %v843_v29 = vld [vmem:[#allocation13 + $0x38] sm:$0xf0]  ;;  %v842_v30 = vld [vmem:[#allocation13 + $0x34] sm:$0xf] }
  0x36   :  { %541 = vmatpush.bf16.msrb.mxu0 %v771_v61  ;;  %554 = vmatpush.bf16.msrb.mxu3 %v775_v62  ;;  %v747_v31 = vor.u32 %v843_v29, %v746_v28  ;;  %v748_v32 = vld [vmem:[#allocation13 + $0x3c] sm:$0xf0]  ;;  %v818_v34 = vld [vmem:[#allocation10 + $0x4] sm:$0xf]  ;;  %v651_v35 = vld [vmem:[#allocation10 + $0x8] sm:$0xf0] }
  0x37   :  { %303 = vmatpush.bf16.msra.mxu2 %v678_v1  ;;  %v751_v33 = vor.u32 %v842_v30, %v748_v32  ;;  %v778_v36 = vld [vmem:[#allocation13 + $0x68] sm:$0xf]  ;;  %v654_v37 = vor.u32 %v818_v34, %v651_v35  ;;  %v850_v38 = vld [vmem:[#allocation13 + $0x70] sm:$0xf0]  ;;  %v734_v40 = vld [vmem:[#allocation13 + $0x18] sm:$0xf] }
  0x38   :  { %v779_v39 = vor.u32 %v850_v38, %v778_v36  ;;  %v840_v41 = vld [vmem:[#allocation13 + $0x20] sm:$0xf0]  ;;  %v839_v43 = vld [vmem:[#allocation13 + $0x1c] sm:$0xf]  ;;  %v736_v44 = vld [vmem:[#allocation13 + $0x24] sm:$0xf0] }
  0x39   :  { %291 = vmatpush.bf16.msra.mxu1 %v666_v6  ;;  %v735_v42 = vor.u32 %v840_v41, %v734_v40  ;;  %v739_v45 = vor.u32 %v839_v43, %v736_v44  ;;  %v766_v46 = vld [vmem:[#allocation13 + $0x50] sm:$0xf]  ;;  %v847_v47 = vld [vmem:[#allocation13 + $0x58] sm:$0xf0]  ;;  %v722_v49 = vld [vmem:[#allocation13] sm:$0xf] }
  0x3a   :  { %542 = vmatpush.bf16.msrb.mxu0 %v759_v7  ;;  %555 = vmatpush.bf16.msrb.mxu3 %v763_v10  ;;  %v767_v48 = vor.u32 %v847_v47, %v766_v46  ;;  %v837_v50 = vld [vmem:[#allocation13 + $0x8] sm:$0xf0]  ;;  %v836_v51 = vld [vmem:[#allocation13 + $0x4] sm:$0xf]  ;;  %v724_v53 = vld [vmem:[#allocation13 + $0xc] sm:$0xf0] }
  0x3b   :  { %304 = vmatpush.bf16.msra.mxu2 %v670_v11  ;;  %v723_v52 = vor.u32 %v837_v50, %v722_v49  ;;  %v727_v54 = vor.u32 %v836_v51, %v724_v53  ;;  %v754_v55 = vld [vmem:[#allocation13 + $0x38] sm:$0xf]  ;;  %v844_v56 = vld [vmem:[#allocation13 + $0x40] sm:$0xf0]  ;;  %v742_v58 = vld [vmem:[#allocation13 + $0x20] sm:$0xf] }
  0x3c   :  { %v755_v57 = vor.u32 %v844_v56, %v754_v55  ;;  %v841_v59 = vld [vmem:[#allocation13 + $0x28] sm:$0xf0]  ;;  %v730_v61 = vld [vmem:[#allocation13 + $0x8] sm:$0xf]  ;;  %v838_v62 = vld [vmem:[#allocation13 + $0x10] sm:$0xf0] }
  0x3d   :  { %292 = vmatpush.bf16.msra.mxu1 %v658_v12  ;;  %v743_v60 = vor.u32 %v841_v59, %v742_v58  ;;  %v731_v63 = vor.u32 %v838_v62, %v730_v61  ;;  %v875_v0 = vld [vmem:[#allocation8] ss:$0 sm:$0xff] }
  0x3e   :  { %543 = vmatpush.bf16.msrb.mxu0 %v747_v31  ;;  %556 = vmatpush.bf16.msrb.mxu3 %v751_v33  ;;  %v876_v4 = vld [vmem:[%s1239_s7] ss:$0 sm:$0xff] }
  0x3f   :  { %305 = vmatpush.bf16.msra.mxu2 %v662_v25  ;;  %v402_v15 = vld [vmem:[%s1241_s9] sm:$0x7] }
  0x40   :  { %v200_v28 = vld [vmem:[%s1237_s5] sm:$0x3]  ;;  %s1132_s5 = smov [#allocation14]  }
  0x41   :  { %293 = vmatpush.bf16.msra.mxu1 %v650_v17  ;;  %v405_v17 = vperm.slane %v402_v15, 1  ;;  %v203_v29 = vperm.slane %v200_v28, 1  ;;  %v202_v32 = vperm.slane %v200_v28, 0  ;;  %s607_s9 = sshll.u32 %s1132_s5, 4  ;;  %s608_s9 = int_to_ptr.vmem [resolvable:$true] %s607_s9 }
  0x42   :  { %544 = vmatpush.bf16.msrb.mxu0 %v735_v42  ;;  %557 = vmatpush.bf16.msrb.mxu3 %v739_v45 }
  0x43   :  { %306 = vmatpush.bf16.msra.mxu2 %v654_v37 }
  0x45   :  { %564 = vmatpush.bf16.msrb.mxu1 %v815_v18  ;;  %v404_v18 = vperm.slane %v402_v15, 0 }
  0x46   :  { %545 = vmatpush.bf16.msrb.mxu0 %v723_v52  ;;  %558 = vmatpush.bf16.msrb.mxu3 %v727_v54 }
  0x49   :  { %565 = vmatpush.bf16.msrb.mxu1 %v803_v21  ;;  %v406_v21 = vperm.slane %v402_v15, 2 }
  0x4d   :  { %566 = vmatpush.bf16.msrb.mxu1 %v791_v27 }
  0x51   :  { %567 = vmatpush.bf16.msrb.mxu1 %v779_v39 }
  0x55   :  { %568 = vmatpush.bf16.msrb.mxu1 %v767_v48 }
  0x59   :  { %569 = vmatpush.bf16.msrb.mxu1 %v755_v57 }
  0x5d   :  { %570 = vmatpush.bf16.msrb.mxu1 %v743_v60 }
  0x61   :  { %571 = vmatpush.bf16.msrb.mxu1 %v731_v63 }
  0xa5   :  { %v178_v1 = vpop.f32.mrf.mxu0 }
  0xa6   :  { %v179_v2 = vadd.f32 %v875_v0, %v178_v1 }
  0xa8   :  { %v182_v3 = vmax.f32 %v179_v2, 0.0 }
  0xaa   :  { %v183_v5 = vpack.c.bf16 %v182_v3, %v182_v3 }
  0xac   :  { %v364_v6 = vpop.f32.mrf.mxu3  ;;  %294 = vmatmul.bf16.vlgmr.msra.gmra.mxu1 %v183_v5  ;;  %307 = vmatmul.bf16.vlgmr.msra.gmra.mxu2 %v183_v5 }
  0xad   :  { %v365_v7 = vadd.f32 %v876_v4, %v364_v6  ;;  %v180_v8 = vpop.f32.mrf.mxu0 }
  0xaf   :  { %v368_v9 = vmax.f32 %v365_v7, 0.0 }
  0xb1   :  { %v369_v10 = vpack.c.bf16 %v368_v9, %v368_v9 }
  0xb3   :  { %546 = vmatmul.bf16.vlgmr.msrb.gmra.mxu0 %v369_v10  ;;  %559 = vmatmul.bf16.vlgmr.msrb.gmra.mxu3 %v369_v10 }
  0xb4   :  { %v366_v11 = vpop.f32.mrf.mxu3 }
  0xbc   :  { %572 = vmatmul.bf16.vlgmr.msrb.gmra.mxu1 %v369_v10 }
 0x129   :  { %v295_v12 = vpop.f32.mrf.mxu1 }
 0x12a   :  { %v296_v35 = vadd.f32 %v295_v12, %v202_v32 }
 0x12f   :  { %v308_v13 = vpop.f32.mrf.mxu2 }
 0x130   :  { %v547_v14 = vpop.f32.mrf.mxu0  ;;  %v309_v33 = vadd.f32 %v308_v13, %v203_v29 }
 0x131   :  { %v297_v16 = vpop.f32.mrf.mxu1  ;;  %v548_v24 = vadd.f32 %v547_v14, %v404_v18 }
 0x132   :  { %v312_v36 = vmax.f32 %v296_v35, %v309_v33 }
 0x136   :  { %v560_v19 = vpop.f32.mrf.mxu3 }
 0x137   :  { %v561_v20 = vadd.f32 %v560_v19, %v405_v17  ;;  %v310_v22 = vpop.f32.mrf.mxu2 }
 0x138   :  { %v549_v23 = vpop.f32.mrf.mxu0 }
 0x139   :  { %v573_v25 = vpop.f32.mrf.mxu1  ;;  %v577_v27 = vmax.f32 %v548_v24, %v561_v20 }
 0x13a   :  { %v574_v26 = vadd.f32 %v573_v25, %v406_v21 }
 0x13c   :  { %v578_v30 = vmax.f32 %v577_v27, %v574_v26 }
 0x13e   :  { %v562_v31 = vpop.f32.mrf.mxu3  ;;  %579 = vmax.xlane.f32.xlu0 %v578_v30 }
 0x141   :  { %v575_v34 = vpop.f32.mrf.mxu1 }
 0x146   :  { %313 = vmax.xlane.f32.xlu0 %v312_v36 }
 0x1b1   :  { %v580_v37 = vpop.xlane.xlu0 %579 }
 0x1b2   :  { %v581_v38 = vsub.f32 %v548_v24, %v580_v37  ;;  %v582_v39 = vsub.f32 %v561_v20, %v580_v37  ;;  %v583_v47 = vsub.f32 %v574_v26, %v580_v37 }
 0x1b4   :  { %v584_v43 = vmul.f32 1.442695, %v581_v38  ;;  %v586_v46 = vmul.f32 1.442695, %v582_v39  ;;  %v588_v48 = vmul.f32 1.442695, %v583_v47 }
 0x1b9   :  { %v314_v40 = vpop.xlane.xlu0 %313 }
 0x1ba   :  { %v315_v41 = vsub.f32 %v296_v35, %v314_v40  ;;  %v316_v42 = vsub.f32 %v309_v33, %v314_v40 }
 0x1bc   :  { %v317_v44 = vmul.f32 1.442695, %v315_v41  ;;  %v319_v45 = vmul.f32 1.442695, %v316_v42 }
 0x1be   :  { %877 = vpow2.f32 %v317_v44 }
 0x1bf   :  { %879 = vpow2.f32 %v319_v45 }
 0x1c0   :  { %881 = vpow2.f32 %v584_v43 }
 0x1c1   :  { %883 = vpow2.f32 %v586_v46 }
 0x1c2   :  { %885 = vpow2.f32 %v588_v48 }
 0x1c4   :  { %v878_v49 = vpop.eup %877 }
 0x1c5   :  { %v880_v50 = vpop.eup %879 }
 0x1c6   :  { %v882_v51 = vpop.eup %881  ;;  %v321_v52 = vadd.f32 %v880_v50, %v878_v49 }
 0x1c7   :  { %v884_v53 = vpop.eup %883 }
 0x1c8   :  { %322 = vadd.xlane.f32.xlu1 %v321_v52  ;;  %v590_v54 = vadd.f32 %v884_v53, %v882_v51  ;;  %v886_v55 = vpop.eup %885 }
 0x1ca   :  { %v591_v56 = vadd.f32 %v886_v55, %v590_v54 }
 0x1d0   :  { %592 = vadd.xlane.f32.xlu1 %v591_v56 }
 0x23b   :  { %v323_v57 = vpop.xlane.xlu1 %322 }
 0x23c   :  { %887 = vlog2.f32 %v323_v57 }
 0x242   :  { %v888_v58 = vpop.eup %887 }
 0x243   :  { %v325_v59 = vmul.f32 0.6931472, %v888_v58  ;;  %v593_v60 = vpop.xlane.xlu1 %592 }
 0x244   :  { %889 = vlog2.f32 %v593_v60 }
 0x245   :  { %v326_v61 = vsub.f32 %v315_v41, %v325_v59  ;;  %v327_v62 = vsub.f32 %v316_v42, %v325_v59 }
 0x247   :  { %328 = vst [vmem:[#allocation14] sm:$0xff] %v326_v61 }
 0x248   :  { %329 = vst [vmem:[#allocation14 + $0x8] sm:$0xff] %v327_v62 }
 0x249   :  { %612 = dma.vmem_to_hbm [thread:$0]  %s608_s9, 256, %s610_s18, [#allocation4]  }
 0x24a   :  { %v890_v63 = vpop.eup %889 }
 0x24b   :  { %v595_v0 = vmul.f32 0.6931472, %v890_v63 }
 0x24d   :  { %v596_v1 = vsub.f32 %v581_v38, %v595_v0  ;;  %v597_v2 = vsub.f32 %v582_v39, %v595_v0  ;;  %v598_v3 = vsub.f32 %v583_v47, %v595_v0 }
 0x24f   :  { %599 = vst [vmem:[#allocation15] sm:$0xff] %v596_v1 }
 0x250   :  { %600 = vst [vmem:[#allocation15 + $0x8] sm:$0xff] %v597_v2 }
 0x251   :  { %601 = vst [vmem:[#allocation15 + $0x10] sm:$0xff] %v598_v3 }
 0x252   :  { %623 = dma.vmem_to_hbm [thread:$0]  %s619_s20, 384, %s621_s22, [#allocation16]  }
 0x253   :  { %1115 = dma.done.wait [#allocation4], 256  }
 0x254   :  { %1116 = vsyncadd [#allocation4], 4294967040 }
 0x255   :  { %1117 = dma.done.wait [#allocation16], 384  }
 0x256   :  { %1118 = vsyncadd [#allocation16], 4294966912 }
 0x257   :  { %632 = vsyncpa [#allocation3], 1 }
 0x258   :  { %633 = vsyncpa [#allocation6], 1 }
 0x259   :  { %634 = vsyncpa [#allocation9], 1 }
 0x25a   :  { %635 = vsyncpa [#allocation12], 1 }
 0x25b   :  { %636 = vsyncpa [#allocation4], 1 }
 0x25c   :  { %637 = vsyncpa [#allocation16], 1 }

</bundles_post_ra>
